<compile_context>
chip_gen: v7x
topology: tpu7x:2x2x1
jax: 0.10.0
libtpu: 0.0.40
codegen_flags: <defaults>
</compile_context>

<pallas_src>
import jax
import jax.numpy as jnp
from jax.experimental import pallas as pl
from jax.experimental.pallas import tpu as pltpu


def _round_up(x, m):
    return (x + m - 1) // m * m


def _value_mlp_kernel(x_ref, w1_ref, b1_ref, w2_ref, b2_ref,
                      w3_ref, b3_ref, wo_ref, bo_ref, o_ref):
    """One batch tile of the fused MLP, computed feature-major (batch on lanes).

    x_ref : (F, TILE_B)   compute-dtype (bf16) input slab (streamed per step)
    w*    : (out, in)     compute-dtype weights (torch nn.Linear layout, resident)
    b*    : (out, 1)      f32 biases (broadcast along the lane/batch axis)
    o_ref : (1, TILE_B)   f32 output row (lane-dense -> unmasked stores)
    """
    act_dt = w1_ref.dtype  # activation / MXU-operand dtype (bf16 by default)

    x = x_ref[...]
    z = jnp.dot(w1_ref[...], x, preferred_element_type=jnp.float32) + b1_ref[...]
    h = jnp.tanh(z.astype(act_dt))                      # bf16 tanh on EUP
    z = jnp.dot(w2_ref[...], h, preferred_element_type=jnp.float32) + b2_ref[...]
    h = jnp.tanh(z.astype(act_dt))
    z = jnp.dot(w3_ref[...], h, preferred_element_type=jnp.float32) + b3_ref[...]
    h = jnp.tanh(z.astype(act_dt))
    o_ref[...] = (
        jnp.dot(wo_ref[...], h, preferred_element_type=jnp.float32) + bo_ref[...]
    )


def value_function_forward(x_t, params, *, tile_b=None):
    """x_t: [input_size, B] feature-major state slab. Returns [B, 1] float32."""
    (w1, b1), (w2, b2), (w3, b3), (wo, bo) = params
    F_dim, B = x_t.shape
    H = w1.shape[0]
    assert w1.shape == (H, F_dim), (w1.shape, (H, F_dim))

    cdt = w1.dtype  # compute dtype for MXU operands / activations

    # Batch tile: multiple of 128 so the lane axis (batch) is fully dense.
    # Cap at 16384 rows: big enough that the ~0.35 us per-step overhead is
    # <15% of per-step compute, small enough that the per-step working set
    # (x double-buffer + f32 matmul intermediates) fits every generation's
    # default scoped-VMEM budget without overrides.
    if tile_b is None:
        tile_b = min(16384, _round_up(B, 128))
    tile_b = max(128, _round_up(tile_b, 128))
    b_pad = _round_up(B, tile_b)
    num_tiles = b_pad // tile_b

    # Lane-axis (batch) zero-pad only; no transpose here (done at the source).
    if b_pad != B:
        x_t = jnp.pad(x_t, ((0, 0), (0, b_pad - B)))
    x_t = x_t.astype(cdt)

    const = lambda i: (0, 0)  # weights/biases: same block every step -> resident

    y = pl.pallas_call(
        _value_mlp_kernel,
        out_shape=jax.ShapeDtypeStruct((1, b_pad), jnp.float32),
        grid_spec=pltpu.PrefetchScalarGridSpec(
            num_scalar_prefetch=0,
            grid=(num_tiles,),
            in_specs=[
                pl.BlockSpec((F_dim, tile_b), lambda i: (0, i)),  # streamed x slab
                pl.BlockSpec(w1.shape, const),
                pl.BlockSpec(b1.shape, const),
                pl.BlockSpec(w2.shape, const),
                pl.BlockSpec(b2.shape, const),
                pl.BlockSpec(w3.shape, const),
                pl.BlockSpec(b3.shape, const),
                pl.BlockSpec(wo.shape, const),
                pl.BlockSpec(bo.shape, const),
            ],
            out_specs=pl.BlockSpec((1, tile_b), lambda i: (0, i)),
        ),
        compiler_params=pltpu.CompilerParams(
            # On v7x, use pltpu.CORE_PARALLEL + even num_tiles>=2 to shard the
            # batch across both TensorCores; "parallel" kept for portability.
            dimension_semantics=("parallel",),
        ),
    )(x_t, w1, b1, w2, b2, w3, b3, wo, bo)

    return y[0, :B][:, None]


def init_params(key, input_size, hidden_size, *, compute_dtype=jnp.bfloat16):
    """nn.Linear-style init (uniform +/- 1/sqrt(fan_in)).

    Weights stored (out, in) like torch; cast to `compute_dtype` for the MXU
    and the tanh activations (use jnp.float32 on v5e). Biases stored (out, 1)
    float32 (added to the f32 accumulator).
    """
    def linear(k, fan_in, fan_out):
        kw, kb = jax.random.split(k)
        bound = 1.0 / jnp.sqrt(fan_in)
        w = jax.random.uniform(kw, (fan_out, fan_in), jnp.float32, -bound, bound)
        b = jax.random.uniform(kb, (fan_out, 1), jnp.float32, -bound, bound)
        return w.astype(compute_dtype), b

    k1, k2, k3, k4 = jax.random.split(key, 4)
    return (
        linear(k1, input_size, hidden_size),
        linear(k2, hidden_size, hidden_size),
        linear(k3, hidden_size, hidden_size),
        linear(k4, hidden_size, 1),
    )


def transform_state(player_obs, enemy_obs, bullet_obs, input_size,
                    dtype=jnp.bfloat16):
    """Flatten each obs, concat feature-major (F, B), zero-pad rows to input_size.

    Emitting the slab feature-major at the source lets XLA fuse the transposes
    with the obs reshapes and feeds the kernel directly (no wrapper transpose).
    """
    B = player_obs.shape[0]
    x_t = jnp.concatenate(
        [player_obs.reshape(B, -1).T,
         enemy_obs.reshape(B, -1).T,
         bullet_obs.reshape(B, -1).T],
        axis=0,
    )
    pad = input_size - x_t.shape[0]
    assert pad >= 0
    if pad:
        x_t = jnp.pad(x_t, ((0, pad), (0, 0)))
    return x_t.astype(dtype)


if __name__ == "__main__":
    key = jax.random.PRNGKey(0)
    k_p, k_e, k_b, k_params = jax.random.split(key, 4)

    # Small synthetic shapes: batch=2, player=4 feats, enemy=4 feats,
    # bullets=8 bullets x 2 coords -> raw features = 4 + 4 + 16 = 24.
    batch = 2
    player_obs = jax.random.normal(k_p, (batch, 4), jnp.float32)
    enemy_obs = jax.random.normal(k_e, (batch, 4), jnp.float32)
    bullet_obs = jax.random.normal(k_b, (batch, 8, 2), jnp.float32)

    hidden_size = 32
    raw_features = 4 + 4 + 8 * 2
    input_size = _round_up(raw_features, 16)  # 24 -> 32: bf16 sublane-pack aligned

    params = init_params(k_params, input_size, hidden_size,
                         compute_dtype=jnp.bfloat16)

    @jax.jit
    def forward(p_obs, e_obs, b_obs):
        x_t = transform_state(p_obs, e_obs, b_obs, input_size)  # (F, B) bf16
        return value_function_forward(x_t, params)

    out = jax.block_until_ready(forward(player_obs, enemy_obs, bullet_obs))
    assert out.shape == (batch, 1), out.shape

    # Matched-precision pure-JAX reference (bf16 MXU operands + bf16 tanh,
    # f32 accumulation) in standard batch-major layout.
    (w1, b1), (w2, b2), (w3, b3), (wo, bo) = params
    x_t = transform_state(player_obs, enemy_obs, bullet_obs, input_size)
    xb = x_t.T  # (B, F)
    act_dt = w1.dtype

    def lin(h, w, b):
        return jnp.dot(h.astype(w.dtype), w.T,
                       preferred_element_type=jnp.float32) + b.T

    h = jnp.tanh(lin(xb, w1, b1).astype(act_dt))
    h = jnp.tanh(lin(h, w2, b2).astype(act_dt))
    h = jnp.tanh(lin(h, w3, b3).astype(act_dt))
    ref = lin(h, wo, bo)

    assert jnp.allclose(out, ref, atol=2e-2, rtol=2e-2), (out, ref)

    print("KERNEL_OK")
</pallas_src>

<mosaic_0001>
module attributes {stable_mosaic.version = 11 : i64} {
  func.func @_value_mlp_kernel(%arg0: i32, %arg1: memref<32x128xbf16, #tpu.memory_space<vmem>>, %arg2: memref<32x32xbf16, #tpu.memory_space<vmem>>, %arg3: memref<32x1xf32, #tpu.memory_space<vmem>>, %arg4: memref<32x32xbf16, #tpu.memory_space<vmem>>, %arg5: memref<32x1xf32, #tpu.memory_space<vmem>>, %arg6: memref<32x32xbf16, #tpu.memory_space<vmem>>, %arg7: memref<32x1xf32, #tpu.memory_space<vmem>>, %arg8: memref<1x32xbf16, #tpu.memory_space<vmem>>, %arg9: memref<1x1xf32, #tpu.memory_space<vmem>>, %arg10: memref<1x128xf32, #tpu.memory_space<vmem>>) attributes {dimension_semantics = [#tpu.dimension_semantics<parallel>], iteration_bounds = array<i64: 1>, scalar_prefetch = 0 : i64, scratch_operands = 0 : i64, tpu.core_type = #tpu.core_type<tc>, window_params = [{transform_indices = @transform_0, window_bounds = array<i64: 32, 128>}, {pipeline_mode = #tpu.pipeline_mode<synchronous>, transform_indices = @transform_1, window_bounds = array<i64: 32, 32>}, {pipeline_mode = #tpu.pipeline_mode<synchronous>, transform_indices = @transform_2, window_bounds = array<i64: 32, 1>}, {pipeline_mode = #tpu.pipeline_mode<synchronous>, transform_indices = @transform_3, window_bounds = array<i64: 32, 32>}, {pipeline_mode = #tpu.pipeline_mode<synchronous>, transform_indices = @transform_4, window_bounds = array<i64: 32, 1>}, {pipeline_mode = #tpu.pipeline_mode<synchronous>, transform_indices = @transform_5, window_bounds = array<i64: 32, 32>}, {pipeline_mode = #tpu.pipeline_mode<synchronous>, transform_indices = @transform_6, window_bounds = array<i64: 32, 1>}, {pipeline_mode = #tpu.pipeline_mode<synchronous>, transform_indices = @transform_7, window_bounds = array<i64: 1, 32>}, {pipeline_mode = #tpu.pipeline_mode<synchronous>, transform_indices = @transform_8, window_bounds = array<i64: 1, 1>}, {transform_indices = @transform_9, window_bounds = array<i64: 1, 128>}]} {
    %c0 = arith.constant 0 : index
    %c0_0 = arith.constant 0 : index
    %0 = vector.load %arg1[%c0, %c0_0] : memref<32x128xbf16, #tpu.memory_space<vmem>>, vector<32x128xbf16>
    %c0_1 = arith.constant 0 : index
    %c0_2 = arith.constant 0 : index
    %1 = vector.load %arg2[%c0_1, %c0_2] : memref<32x32xbf16, #tpu.memory_space<vmem>>, vector<32x32xbf16>
    %cst = arith.constant dense<0.000000e+00> : vector<32x128xf32>
    %2 = tpu.matmul %1, %0, %cst {dimension_numbers = #tpu.dot_dimension_numbers<[1], [0], [0], [1], [0, 0, 1, 1], [], []>} : vector<32x32xbf16>, vector<32x128xbf16>, vector<32x128xf32> -> vector<32x128xf32>
    %c0_3 = arith.constant 0 : index
    %c0_4 = arith.constant 0 : index
    %3 = vector.load %arg3[%c0_3, %c0_4] : memref<32x1xf32, #tpu.memory_space<vmem>>, vector<32x1xf32>
    %4 = vector.broadcast %3 : vector<32x1xf32> to vector<32x128xf32>
    %5 = arith.addf %2, %4 : vector<32x128xf32>
    %6 = arith.truncf %5 : vector<32x128xf32> to vector<32x128xbf16>
    %7 = math.tanh %6 : vector<32x128xbf16>
    %c0_5 = arith.constant 0 : index
    %c0_6 = arith.constant 0 : index
    %8 = vector.load %arg4[%c0_5, %c0_6] : memref<32x32xbf16, #tpu.memory_space<vmem>>, vector<32x32xbf16>
    %cst_7 = arith.constant dense<0.000000e+00> : vector<32x128xf32>
    %9 = tpu.matmul %8, %7, %cst_7 {dimension_numbers = #tpu.dot_dimension_numbers<[1], [0], [0], [1], [0, 0, 1, 1], [], []>} : vector<32x32xbf16>, vector<32x128xbf16>, vector<32x128xf32> -> vector<32x128xf32>
    %c0_8 = arith.constant 0 : index
    %c0_9 = arith.constant 0 : index
    %10 = vector.load %arg5[%c0_8, %c0_9] : memref<32x1xf32, #tpu.memory_space<vmem>>, vector<32x1xf32>
    %11 = vector.broadcast %10 : vector<32x1xf32> to vector<32x128xf32>
    %12 = arith.addf %9, %11 : vector<32x128xf32>
    %13 = arith.truncf %12 : vector<32x128xf32> to vector<32x128xbf16>
    %14 = math.tanh %13 : vector<32x128xbf16>
    %c0_10 = arith.constant 0 : index
    %c0_11 = arith.constant 0 : index
    %15 = vector.load %arg6[%c0_10, %c0_11] : memref<32x32xbf16, #tpu.memory_space<vmem>>, vector<32x32xbf16>
    %cst_12 = arith.constant dense<0.000000e+00> : vector<32x128xf32>
    %16 = tpu.matmul %15, %14, %cst_12 {dimension_numbers = #tpu.dot_dimension_numbers<[1], [0], [0], [1], [0, 0, 1, 1], [], []>} : vector<32x32xbf16>, vector<32x128xbf16>, vector<32x128xf32> -> vector<32x128xf32>
    %c0_13 = arith.constant 0 : index
    %c0_14 = arith.constant 0 : index
    %17 = vector.load %arg7[%c0_13, %c0_14] : memref<32x1xf32, #tpu.memory_space<vmem>>, vector<32x1xf32>
    %18 = vector.broadcast %17 : vector<32x1xf32> to vector<32x128xf32>
    %19 = arith.addf %16, %18 : vector<32x128xf32>
    %20 = arith.truncf %19 : vector<32x128xf32> to vector<32x128xbf16>
    %21 = math.tanh %20 : vector<32x128xbf16>
    %c0_15 = arith.constant 0 : index
    %c0_16 = arith.constant 0 : index
    %22 = vector.load %arg8[%c0_15, %c0_16] : memref<1x32xbf16, #tpu.memory_space<vmem>>, vector<1x32xbf16>
    %cst_17 = arith.constant dense<0.000000e+00> : vector<1x128xf32>
    %23 = tpu.matmul %22, %21, %cst_17 {dimension_numbers = #tpu.dot_dimension_numbers<[1], [0], [0], [1], [0, 0, 1, 1], [], []>} : vector<1x32xbf16>, vector<32x128xbf16>, vector<1x128xf32> -> vector<1x128xf32>
    %c0_18 = arith.constant 0 : index
    %c0_19 = arith.constant 0 : index
    %24 = vector.load %arg9[%c0_18, %c0_19] : memref<1x1xf32, #tpu.memory_space<vmem>>, vector<1x1xf32>
    %25 = vector.broadcast %24 : vector<1x1xf32> to vector<1x128xf32>
    %26 = arith.addf %23, %25 : vector<1x128xf32>
    %c0_20 = arith.constant 0 : index
    %c0_21 = arith.constant 0 : index
    %27 = vector.load %arg10[%c0_20, %c0_21] : memref<1x128xf32, #tpu.memory_space<vmem>>, vector<1x128xf32>
    tpu.vector_store %arg10[%c0_20, %c0_21], %26 {strides = array<i32>} : memref<1x128xf32, #tpu.memory_space<vmem>>, vector<1x128xf32>,
    return
  }
  func.func @transform_0(%arg0: i32) -> (i32, i32) {
    %c0_i32 = arith.constant 0 : i32
    %c0_i32_0 = arith.constant 0 : i32
    return %c0_i32, %arg0 : i32, i32
  }
  func.func @transform_1(%arg0: i32) -> (i32, i32) {
    %c0_i32 = arith.constant 0 : i32
    %c0_i32_0 = arith.constant 0 : i32
    %c0_i32_1 = arith.constant 0 : i32
    return %c0_i32, %c0_i32_0 : i32, i32
  }
  func.func @transform_2(%arg0: i32) -> (i32, i32) {
    %c0_i32 = arith.constant 0 : i32
    %c0_i32_0 = arith.constant 0 : i32
    %c0_i32_1 = arith.constant 0 : i32
    return %c0_i32, %c0_i32_0 : i32, i32
  }
  func.func @transform_3(%arg0: i32) -> (i32, i32) {
    %c0_i32 = arith.constant 0 : i32
    %c0_i32_0 = arith.constant 0 : i32
    %c0_i32_1 = arith.constant 0 : i32
    return %c0_i32, %c0_i32_0 : i32, i32
  }
  func.func @transform_4(%arg0: i32) -> (i32, i32) {
    %c0_i32 = arith.constant 0 : i32
    %c0_i32_0 = arith.constant 0 : i32
    %c0_i32_1 = arith.constant 0 : i32
    return %c0_i32, %c0_i32_0 : i32, i32
  }
  func.func @transform_5(%arg0: i32) -> (i32, i32) {
    %c0_i32 = arith.constant 0 : i32
    %c0_i32_0 = arith.constant 0 : i32
    %c0_i32_1 = arith.constant 0 : i32
    return %c0_i32, %c0_i32_0 : i32, i32
  }
  func.func @transform_6(%arg0: i32) -> (i32, i32) {
    %c0_i32 = arith.constant 0 : i32
    %c0_i32_0 = arith.constant 0 : i32
    %c0_i32_1 = arith.constant 0 : i32
    return %c0_i32, %c0_i32_0 : i32, i32
  }
  func.func @transform_7(%arg0: i32) -> (i32, i32) {
    %c0_i32 = arith.constant 0 : i32
    %c0_i32_0 = arith.constant 0 : i32
    %c0_i32_1 = arith.constant 0 : i32
    return %c0_i32, %c0_i32_0 : i32, i32
  }
  func.func @transform_8(%arg0: i32) -> (i32, i32) {
    %c0_i32 = arith.constant 0 : i32
    %c0_i32_0 = arith.constant 0 : i32
    %c0_i32_1 = arith.constant 0 : i32
    return %c0_i32, %c0_i32_0 : i32, i32
  }
  func.func @transform_9(%arg0: i32) -> (i32, i32) {
    %c0_i32 = arith.constant 0 : i32
    %c0_i32_0 = arith.constant 0 : i32
    return %c0_i32, %arg0 : i32, i32
  }
}

</mosaic_0001>

<bundles_post_ra>
// kernel: forward.1
= control target key start
LH: loop header
LB: loop body
LE: loop exit
PB: predicated region body
PF: predicated region fallthrough
CT: control target
= control target key end

     0   :  { %s669_s0 = inlined_call_operand.vmem [shape: bf16[32,128], index: 0, kind: input, shape index: {}]   ;;  %s670_s1 = inlined_call_operand.hbm [shape: bf16[32,32], index: 1, kind: input, shape index: {}]   ;;  %s671_s2 = inlined_call_operand.vmem [shape: f32[32,1], index: 2, kind: input, shape index: {}]   ;;  %s672_s3 = inlined_call_operand.vmem [shape: bf16[32,32], index: 3, kind: input, shape index: {}]   ;;  %s673_s4 = inlined_call_operand.vmem [shape: f32[32,1], index: 4, kind: input, shape index: {}]   ;;  %s674_s5 = inlined_call_operand.vmem [shape: bf16[32,32], index: 5, kind: input, shape index: {}]   ;;  %s675_s6 = inlined_call_operand.vmem [shape: f32[32,1], index: 6, kind: input, shape index: {}]   ;;  %s676_s7 = inlined_call_operand.vmem [shape: bf16[1,32], index: 7, kind: input, shape index: {}]   ;;  %s677_s8 = inlined_call_operand.<no memory space> [shape: f32[1,1], index: 8, kind: input, shape index: {}]   ;;  %s678_s9 = inlined_call_operand.vmem [shape: f32[1,128], index: 9, kind: output, shape index: {}]  }
   0x1   :  { %v14_v0 = vstv %s677_s8 }
   0x2   :  { %15 = vst [vmem:[#allocation2] sm:$0x1] %v14_v0 }
   0x3   :  { %16 = vsyncpa [#allocation4], 0  ;;  %s531_s11 = smov [#allocation3]   ;;  %s507_s15 = scalar_lea.hbm %s670_s1, 256 }
   0x4   :  { %s24_s12 = sshll.u32 %s531_s11, 4  ;;  %p508_p0 = scmp.ne.s32.totalorder %s670_s1, %s507_s15  ;;  %s25_s12 = int_to_ptr.vmem [resolvable:$true] %s24_s12 }
   0x5   :  { %p511_p1 = scmp.lt.u32.totalorder %s507_s15, %s670_s1 }
   0x7   :  { %p513_p2 = pnand %p511_p1, %p508_p0 }
   0x9   :  { %516 = shalt.err (!%p513_p2)
}
   0xa   :  { %s517_s8 = scalar_lea.vmem %s25_s12, 256  ;;  %p522_p4 = scmp.lt.s32.totalorder %s25_s12, %s25_s12 }
   0xb   :  { %p518_p3 = scmp.ne.s32.totalorder %s25_s12, %s517_s8  ;;  %p523_p5 = scmp.lt.s32.totalorder %s517_s8, %s517_s8 }
   0xd   :  { %p524_p6 = por %p523_p5, %p522_p4 }
   0xf   :  { %p525_p7 = pnand %p524_p6, %p518_p3 }
  0x11   :  { %528 = shalt.err (!%p525_p7)
}
  0x12   :  { %s532_s20 = smov 64   ;;  %s533_s21 = smov 4  }
  0x13   :  { %30 = dma.hbm_to_vmem [thread:$0]  %s670_s1, 256, %s25_s12, [#allocation4], %s532_s20, %s532_s20, %s533_s21  }
  0x14   :  { %529 = dma.done.wait [#allocation4], 256  }
  0x15   :  { %530 = vsyncadd [#allocation4], 4294967040  ;;  %v534_v1 = vmov 0   ;;  %v487_v2 = vld [vmem:[%s669_s0] sm:$0xff]   ;;  %v488_v3 = vld [vmem:[%s669_s0 + $0x8] sm:$0xff]   ;;  %vm103_vm0 = vcmask 261120  }
  0x16   :  { %485 = vset.pattern.permute.xlu0 %v534_v1  ;;  %486 = vset.pattern.permute.xlu1 %v534_v1  ;;  %v489_v4 = vld [vmem:[#allocation3] sm:$0xff]   ;;  %v59_v6 = vld [vmem:[%s671_s2 + $0x10] sm:$0xff]  ;;  %v60_v9 = vld [vmem:[%s671_s2 + $0x18] sm:$0xff]  ;;  %v535_v55 = vmov 0.0   ;;  %vm536_vm1 = vmmov 0  }
  0x17   :  { %447 = vmatprep.subr.bf16.mxu0 %v487_v2  ;;  %451 = vmatprep.mubr.msk.bf16.mxu0 %vm103_vm0, %v489_v4  ;;  %v57_v5 = vld [vmem:[%s671_s2] sm:$0xff]  ;;  %v490_v7 = vld [vmem:[#allocation3 + $0x8] sm:$0xff]   ;;  %v170_v13 = vld [vmem:[%s673_s4 + $0x18] sm:$0xff] }
  0x18   :  { %448 = vmatpush3.bf16.msra.mxu0 %v487_v2  ;;  %63 = vperm.xlu0 %485, %v57_v5   ;;  %v58_v8 = vld [vmem:[%s671_s2 + $0x8] sm:$0xff]  ;;  %v167_v10 = vld [vmem:[%s673_s4] sm:$0xff]  ;;  %v169_v12 = vld [vmem:[%s673_s4 + $0x10] sm:$0xff] }
  0x19   :  { %449 = vmatprep.subr.bf16.mxu0 %v488_v3  ;;  %73 = vperm.xlu1 %486, %v59_v6   ;;  %v168_v11 = vld [vmem:[%s673_s4 + $0x8] sm:$0xff]  ;;  %v264_v14 = vld [vmem:[%s675_s6] sm:$0xff]  ;;  %v266_v16 = vld [vmem:[%s675_s6 + $0x10] sm:$0xff] }
  0x1a   :  { %v265_v15 = vld [vmem:[%s675_s6 + $0x8] sm:$0xff]  ;;  %v267_v17 = vld [vmem:[%s675_s6 + $0x18] sm:$0xff]  ;;  %v358_v18 = vld [vmem:[#allocation2] sm:$0x1] }
  0x1b   :  { %v491_v19 = vld [vmem:[%s672_s3] sm:$0xff]   ;;  %v492_v36 = vld [vmem:[%s672_s3 + $0x8] sm:$0xff]  }
  0x1c   :  { %450 = vmatpush3.bf16.msra.mxu0 %v488_v3  ;;  %68 = vperm.xlu0 %485, %v58_v8   ;;  %v493_v37 = vld [vmem:[%s674_s5] sm:$0xff]   ;;  %v494_v54 = vld [vmem:[%s674_s5 + $0x8] sm:$0xff]  }
  0x1d   :  { %78 = vperm.xlu1 %486, %v60_v9   ;;  %459 = vmatprep.mubr.msk.bf16.mxu1 %vm103_vm0, %v491_v19  ;;  %v357_v8 = vld [vmem:[%s676_s7] sm:$0x1]  ;;  %v364_v9 = vlaneseq }
  0x1f   :  { %452 = vmatmul.mubr.msk.bf16.vlgmr.msra.gmra.mrb[0].mxu0 %vm103_vm0, %v490_v7 }
  0x20   :  { %173 = vperm.xlu0 %485, %v167_v10   ;;  %467 = vmatprep.mubr.msk.bf16.mxu0 %vm103_vm0, %v493_v37  ;;  %v365_v10 = vshrl.u32 %v364_v9, 7 }
  0x21   :  { %178 = vperm.xlu1 %486, %v168_v11  }
  0x22   :  { %v366_v11 = vsub.s32 0, %v365_v10 }
  0x24   :  { %183 = vperm.xlu0 %485, %v169_v12  }
  0x25   :  { %188 = vperm.xlu1 %486, %v170_v13  }
  0x28   :  { %270 = vperm.xlu0 %485, %v264_v14  }
  0x29   :  { %275 = vperm.xlu1 %486, %v265_v15  }
  0x2c   :  { %280 = vperm.xlu0 %485, %v266_v16  }
  0x2d   :  { %285 = vperm.xlu1 %486, %v267_v17  }
  0x30   :  { %361 = vperm.xlu0 %485, %v358_v18  }
  0x97   :  { %v64_v21 = vpop.permute.xlu0 %63 }
  0x98   :  { %v74_v20 = vpop.permute.xlu1 %73 }
  0x9b   :  { %v69_v26 = vpop.permute.xlu0 %68 }
  0x9c   :  { %v79_v24 = vpop.permute.xlu1 %78 }
  0x9f   :  { %v174_v38 = vpop.permute.xlu0 %173 }
  0xa0   :  { %v179_v39 = vpop.permute.xlu1 %178 }
  0xa3   :  { %v184_v41 = vpop.permute.xlu0 %183 }
  0xa4   :  { %v189_v43 = vpop.permute.xlu1 %188 }
  0xa7   :  { %v271_v56 = vpop.permute.xlu0 %270 }
  0xa8   :  { %v276_v57 = vpop.permute.xlu1 %275 }
  0xab   :  { %v281_v59 = vpop.permute.xlu0 %280 }
  0xac   :  { %v286_v61 = vpop.permute.xlu1 %285 }
  0xaf   :  { %v362_v12 = vpop.permute.xlu0 %361 }
  0xb0   :  { %v367_v13 = vrot.slane %v362_v12, %v366_v11 }
  0xf2   :  { %v453_v22 = vpop.f32.mrb[0].mxu0 }
  0xf3   :  { %v144_v23 = vpop.f32.mrb[1].mxu0  ;;  %v153_v27 = vadd.f32 %v453_v22, %v74_v20 }
  0xf4   :  { %v454_v25 = vpop.f32.mrb[2].mxu0  ;;  %v145_v30 = vadd.f32 %v144_v23, %v64_v21 }
  0xf5   :  { %v156_v28 = vadd.f32 %v454_v25, %v79_v24  ;;  %v147_v29 = vpop.f32.mrb[3].mxu0 }
  0xf6   :  { %v148_v31 = vadd.f32 %v147_v29, %v69_v26 }
  0xf7   :  { %v160_v32 = vpack.c.bf16 %v156_v28, %v153_v27 }
  0xf8   :  { %v159_v33 = vpack.c.bf16 %v148_v31, %v145_v30 }
  0xfa   :  { %495 = vtanh.bf16 %v159_v33 }
  0xfb   :  { %497 = vtanh.bf16 %v160_v32 }
 0x105   :  { %v496_v34 = vpop.eup %495 }
 0x106   :  { %455 = vmatprep.subr.bf16.mxu1 %v496_v34  ;;  %v498_v35 = vpop.eup %497 }
 0x107   :  { %456 = vmatpush3.bf16.msra.mxu1 %v496_v34 }
 0x108   :  { %457 = vmatprep.subr.bf16.mxu1 %v498_v35 }
 0x10b   :  { %458 = vmatpush3.bf16.msra.mxu1 %v498_v35 }
 0x10c   :  { %471 = vmatprep.subr.bf16.mxu1 %v535_v55 }
 0x10e   :  { %460 = vmatmul.mubr.msk.bf16.vlgmr.msra.gmra.mrb[0].mxu1 %vm103_vm0, %v492_v36 }
 0x10f   :  { %475 = vmatprep.mubr.msk.bf16.mxu1 %vm536_vm1, %v535_v55 }
 0x1e1   :  { %v461_v40 = vpop.f32.mrb[0].mxu1 }
 0x1e2   :  { %v241_v42 = vpop.f32.mrb[1].mxu1  ;;  %v250_v45 = vadd.f32 %v461_v40, %v184_v41 }
 0x1e3   :  { %v462_v44 = vpop.f32.mrb[2].mxu1  ;;  %v242_v48 = vadd.f32 %v241_v42, %v174_v38 }
 0x1e4   :  { %v253_v46 = vadd.f32 %v462_v44, %v189_v43  ;;  %v244_v47 = vpop.f32.mrb[3].mxu1 }
 0x1e5   :  { %v245_v49 = vadd.f32 %v244_v47, %v179_v39 }
 0x1e6   :  { %v257_v50 = vpack.c.bf16 %v253_v46, %v250_v45 }
 0x1e7   :  { %v256_v51 = vpack.c.bf16 %v245_v49, %v242_v48 }
 0x1e9   :  { %499 = vtanh.bf16 %v256_v51 }
 0x1ea   :  { %501 = vtanh.bf16 %v257_v50 }
 0x1f4   :  { %v500_v52 = vpop.eup %499 }
 0x1f5   :  { %463 = vmatprep.subr.bf16.mxu0 %v500_v52  ;;  %v502_v53 = vpop.eup %501 }
 0x1f6   :  { %464 = vmatpush3.bf16.msra.mxu0 %v500_v52 }
 0x1f7   :  { %465 = vmatprep.subr.bf16.mxu0 %v502_v53 }
 0x1fa   :  { %466 = vmatpush3.bf16.msra.mxu0 %v502_v53 }
 0x1fd   :  { %468 = vmatmul.mubr.msk.bf16.vlgmr.msra.gmra.mrb[4].mxu0 %vm103_vm0, %v494_v54 }
 0x2d0   :  { %v469_v58 = vpop.f32.mrb[4].mxu0 }
 0x2d1   :  { %v338_v60 = vpop.f32.mrb[5].mxu0  ;;  %v347_v63 = vadd.f32 %v469_v58, %v281_v59 }
 0x2d2   :  { %v470_v62 = vpop.f32.mrb[6].mxu0  ;;  %v339_v2 = vadd.f32 %v338_v60, %v271_v56 }
 0x2d3   :  { %v350_v0 = vadd.f32 %v470_v62, %v286_v61  ;;  %v341_v1 = vpop.f32.mrb[7].mxu0 }
 0x2d4   :  { %v342_v3 = vadd.f32 %v341_v1, %v276_v57 }
 0x2d5   :  { %v354_v4 = vpack.c.bf16 %v350_v0, %v347_v63 }
 0x2d6   :  { %v353_v5 = vpack.c.bf16 %v342_v3, %v339_v2 }
 0x2d8   :  { %503 = vtanh.bf16 %v353_v5 }
 0x2d9   :  { %505 = vtanh.bf16 %v354_v4 }
 0x2e3   :  { %v504_v6 = vpop.eup %503 }
 0x2e4   :  { %472 = vmatpush3.bf16.msra.mxu1 %v504_v6  ;;  %v506_v7 = vpop.eup %505 }
 0x2e5   :  { %473 = vmatprep.subr.bf16.mxu1 %v535_v55 }
 0x2e8   :  { %474 = vmatpush3.bf16.msra.mxu1 %v506_v7 }
 0x2eb   :  { %476 = vmatmul.mubr.msk.bf16.vlgmr.msra.gmra.mrb[4].mxu1 %vm103_vm0, %v357_v8 }
 0x3be   :  { %v405_v14 = vpop.f32.mrb[4].mxu1 }
 0x3bf   :  { %v406_v15 = vadd.f32 %v405_v14, %v367_v13  ;;  %v477_v16 = vpop.f32.mrb[5].mxu1 }
 0x3c0   :  { %v408_v17 = vpop.f32.mrb[6].mxu1 }
 0x3c1   :  { %411 = vst [vmem:[%s678_s9] sm:$0x1] %v406_v15  ;;  %v478_v18 = vpop.f32.mrb[7].mxu1 }
 0x3c2   :  { %416 = vsyncpa [#allocation4], 1 }

</bundles_post_ra>
